<compile_context>
chip_gen: v6e
topology: v6e:2x2x1
jax: 0.10.0
libtpu: 0.0.40
codegen_flags: <defaults>
</compile_context>

<pallas_src>
import math

import jax
import jax.numpy as jnp
from jax.experimental import pallas as pl
from jax.experimental.pallas import tpu as pltpu


# ---------------------------------------------------------------------------
# Helpers
# ---------------------------------------------------------------------------
def _round_up(x, m):
    return ((x + m - 1) // m) * m


def _pick_tile(dim, preferred):
    """Largest candidate that evenly divides `dim`, else the full dim.

    A full-extent block always satisfies the (8,128) BlockSpec rule."""
    for t in preferred:
        if t <= dim and dim % t == 0:
            return t
    return dim


def _vmem_limit():
    """Scoped-VMEM budget from the actual chip: ~46 MiB on v7x (64 MiB phys),
    ~92 MiB on v5e/v6e (128 MiB phys)."""
    try:
        cap = int(getattr(pltpu.get_tpu_info(), "vmem_capacity_bytes",
                          64 * 1024 * 1024))
    except Exception:
        cap = 64 * 1024 * 1024
    return max(32 * 1024 * 1024, min(96 * 1024 * 1024, int(cap * 0.72)))


# ---------------------------------------------------------------------------
# Tiled linear (x @ W + b) kernel
# ---------------------------------------------------------------------------
def _linear_kernel(x_ref, w_ref, b_ref, o_ref, acc_ref):
    # x: (tm, tk), w: (tk, tn), b: (1, tn), o: (tm, tn); grid = (M/tm, N/tn, K/tk)
    @pl.when(pl.program_id(2) == 0)
    def _():
        acc_ref[...] = jnp.zeros_like(acc_ref)

    # bf16 MXU operands, f32 accumulation.
    acc_ref[...] += jnp.dot(x_ref[...].astype(jnp.bfloat16),
                            w_ref[...].astype(jnp.bfloat16),
                            preferred_element_type=jnp.float32)

    @pl.when(pl.program_id(2) == pl.num_programs(2) - 1)
    def _():
        o_ref[...] = (acc_ref[...] + b_ref[...].astype(jnp.float32)).astype(o_ref.dtype)


def pallas_linear(x2d, w, b):
    """x2d: (M, K), w: (K, N) (bf16 ok), b: (1, N) f32 -> (M, N)."""
    M, K = x2d.shape
    _, N = w.shape

    # 128-granular row tiles; pad the row dim so the grid divides evenly instead
    # of falling back to one giant block.
    if M >= 256 and M % 256 == 0:
        tm = 256
    elif M >= 128:
        tm = 128
    else:
        tm = _round_up(M, 8)
    Mp = _round_up(M, tm)
    if Mp != M:
        x2d = jnp.pad(x2d, ((0, Mp - M), (0, 0)))

    tn = _pick_tile(N, (512, 256, 128))
    tk = _pick_tile(K, (512, 256, 128))
    grid = (Mp // tm, N // tn, K // tk)

    flops = 2 * Mp * N * K
    bytes_acc = int(x2d.size * x2d.dtype.itemsize + w.size * w.dtype.itemsize
                    + Mp * N * x2d.dtype.itemsize + b.size * b.dtype.itemsize)

    out = pl.pallas_call(
        _linear_kernel,
        out_shape=jax.ShapeDtypeStruct((Mp, N), x2d.dtype),
        grid_spec=pltpu.PrefetchScalarGridSpec(
            num_scalar_prefetch=0,
            grid=grid,
            in_specs=[
                pl.BlockSpec((tm, tk), lambda i, j, k: (i, k)),
                pl.BlockSpec((tk, tn), lambda i, j, k: (k, j)),
                pl.BlockSpec((1, tn), lambda i, j, k: (0, j)),
            ],
            out_specs=pl.BlockSpec((tm, tn), lambda i, j, k: (i, j)),
            scratch_shapes=[pltpu.VMEM((tm, tn), jnp.float32)],
        ),
        compiler_params=pltpu.CompilerParams(
            dimension_semantics=("parallel", "parallel", "arbitrary"),
            vmem_limit_bytes=_vmem_limit(),
        ),
        cost_estimate=pl.CostEstimate(
            flops=flops, transcendentals=0, bytes_accessed=bytes_acc),
    )(x2d, w, b)
    return out[:M] if Mp != M else out


# ---------------------------------------------------------------------------
# Flash-style multi-head cross attention (per-batch, per-head 2-D matmuls,
# online softmax over the memory axis)
# ---------------------------------------------------------------------------
def _flash_attn_kernel(q_ref, k_ref, v_ref, o_ref, m_sc, l_sc, acc_sc):
    # q_ref: (tT, D), k_ref/v_ref: (tKv, D), o_ref: (tT, D)
    # grid = (B, H, T//tT, Tm//tKv); the Tm axis is innermost ("arbitrary").
    s_idx = pl.program_id(3)

    @pl.when(s_idx == 0)
    def _():
        m_sc[...] = jnp.full(m_sc.shape, -jnp.inf, dtype=jnp.float32)
        l_sc[...] = jnp.zeros_like(l_sc)
        acc_sc[...] = jnp.zeros_like(acc_sc)

    q = q_ref[...].astype(jnp.bfloat16)          # 1/sqrt(D) already folded into Wq
    k = k_ref[...].astype(jnp.bfloat16)

    # Scores: contract over D directly (no k.T materialisation), f32 accumulate.
    s = jax.lax.dot_general(q, k, (((1,), (1,)), ((), ())),
                            preferred_element_type=jnp.float32)   # (tT, tKv)

    m_prev = m_sc[...]
    m_new = jnp.maximum(m_prev, jnp.max(s, axis=-1, keepdims=True))
    alpha = jnp.exp(m_prev - m_new)
    p = jnp.exp(s - m_new)
    l_sc[...] = alpha * l_sc[...] + jnp.sum(p, axis=-1, keepdims=True)
    acc_sc[...] = alpha * acc_sc[...] + jnp.dot(
        p.astype(jnp.bfloat16), v_ref[...].astype(jnp.bfloat16),
        preferred_element_type=jnp.float32)
    m_sc[...] = m_new

    @pl.when(s_idx == pl.num_programs(3) - 1)
    def _():
        inv = pl.reciprocal(l_sc[...], approx=True)   # EUP slot, not a VALU divide
        o_ref[...] = (acc_sc[...] * inv).astype(o_ref.dtype)


def pallas_mha(q4, kv5):
    """q4: (B, T, H, D), kv5: (B, Tm, 2, H, D) with slot 0=k, 1=v -> (B, T, H, D)."""
    B, T, H, D = q4.shape
    Tm = kv5.shape[1]
    assert kv5.shape == (B, Tm, 2, H, D)

    tT = _pick_tile(T, (256, 128))       # modest q tiles keep v7x under budget
    tKv = _pick_tile(Tm, (512, 256, 128))
    grid = (B, H, T // tT, Tm // tKv)

    flops = 4 * B * H * T * Tm * D
    bytes_acc = int(2 * q4.size * q4.dtype.itemsize + kv5.size * kv5.dtype.itemsize)

    # TODO(synk): when D < 128 the per-head output store is lane-sparse; merging
    # heads into a (B, T, C) lane-dense output block would need the head axis to
    # revisit a resident output block instead of living on the grid.
    return pl.pallas_call(
        _flash_attn_kernel,
        out_shape=jax.ShapeDtypeStruct((B, T, H, D), q4.dtype),
        grid_spec=pltpu.PrefetchScalarGridSpec(
            num_scalar_prefetch=0,
            grid=grid,
            in_specs=[
                # q: one head's (tT, D) tile.
                pl.BlockSpec((None, tT, None, D),
                             lambda b, h, t, s: (b, t, h, 0)),
                # k: slot 0 of the fused kv tensor, one head, one Tm tile.
                pl.BlockSpec((None, tKv, None, None, D),
                             lambda b, h, t, s: (b, s, 0, h, 0)),
                # v: slot 1 of the fused kv tensor, one head, one Tm tile.
                pl.BlockSpec((None, tKv, None, None, D),
                             lambda b, h, t, s: (b, s, 1, h, 0)),
            ],
            out_specs=pl.BlockSpec((None, tT, None, D),
                                   lambda b, h, t, s: (b, t, h, 0)),
            scratch_shapes=[
                pltpu.VMEM((tT, 1), jnp.float32),   # running max m
                pltpu.VMEM((tT, 1), jnp.float32),   # running sum l
                pltpu.VMEM((tT, D), jnp.float32),   # output accumulator
            ],
        ),
        compiler_params=pltpu.CompilerParams(
            # Keep megacore sharding on B / H (disjoint per-head KV fetches);
            # the query-tile axis stays "arbitrary" so cores don't duplicate KV
            # traffic; the Tm axis is the online-softmax reduction.
            dimension_semantics=("parallel", "parallel", "arbitrary", "arbitrary"),
            vmem_limit_bytes=_vmem_limit(),
        ),
        cost_estimate=pl.CostEstimate(
            flops=flops, transcendentals=B * H * T * Tm, bytes_accessed=bytes_acc),
    )(q4, kv5, kv5)


# ---------------------------------------------------------------------------
# CrossAttention module (parameters + forward)
# ---------------------------------------------------------------------------
def init_cross_attention_params(key, n_embd, bias=True):
    """Deterministic parameter init. Weights stored (in_features, out_features)."""
    k1, k2, k3 = jax.random.split(key, 3)

    def xavier_uniform(k, fan_in, fan_out):
        limit = math.sqrt(6.0 / (fan_in + fan_out))
        return jax.random.uniform(
            k, (fan_in, fan_out), minval=-limit, maxval=limit, dtype=jnp.float32)

    return {
        "wq_w": xavier_uniform(k1, n_embd, n_embd),
        "wkv_w": xavier_uniform(k2, n_embd, 2 * n_embd),
        "proj_w": xavier_uniform(k3, n_embd, n_embd),
        "wq_b": jnp.zeros((1, n_embd), jnp.float32) if bias else None,
        "wkv_b": jnp.zeros((1, 2 * n_embd), jnp.float32) if bias else None,
        "proj_b": jnp.zeros((1, n_embd), jnp.float32) if bias else None,
    }


def cross_attention_forward(params, x, mem, n_head):
    """x: (B, T, C), mem: (B, T_MEM, C) -> (B, T, C)."""
    B, T, C = x.shape
    T_MEM = mem.shape[1]
    assert x.shape[-1] == mem.shape[-1]
    assert C % n_head == 0
    D = C // n_head

    f32 = jnp.float32
    bq = params["wq_b"] if params["wq_b"] is not None else jnp.zeros((1, C), f32)
    bkv = params["wkv_b"] if params["wkv_b"] is not None else jnp.zeros((1, 2 * C), f32)
    bp = params["proj_b"] if params["proj_b"] is not None else jnp.zeros((1, C), f32)

    # Fold 1/sqrt(head_dim) into the q projection (zero runtime cost if done at
    # init time in a real deployment) and cast weights to bf16 for the MXU.
    inv_sqrt_d = 1.0 / math.sqrt(D)
    wq = (params["wq_w"] * inv_sqrt_d).astype(jnp.bfloat16)
    bq = bq * inv_sqrt_d
    wkv = params["wkv_w"].astype(jnp.bfloat16)
    wp = params["proj_w"].astype(jnp.bfloat16)

    # Projections (tiled, pipelined Pallas matmuls).
    q = pallas_linear(x.reshape(B * T, C), wq, bq)              # (B*T, C)
    kv = pallas_linear(mem.reshape(B * T_MEM, C), wkv, bkv)     # (B*T_MEM, 2C)

    # Free, contiguous reshapes only — the k/v split (slot 0 / slot 1) and the
    # head split happen at DMA level via BlockSpec index_maps.
    q4 = q.reshape(B, T, n_head, D)                             # (B, T, H, D)
    kv5 = kv.reshape(B, T_MEM, 2, n_head, D)                    # (B, Tm, 2, H, D)

    y = pallas_mha(q4, kv5)                                     # (B, T, H, D)

    # Output projection (dropout is identity in eval mode).
    # TODO(synk): training-mode dropout (drop_p > 0) not implemented; eval only.
    # TODO(synk): fuse this projection into the attention epilogue to save the
    # y HBM round trip (largest relative win on v5e).
    out = pallas_linear(y.reshape(B * T, C), wp, bp)            # (B*T, C)
    return out.reshape(B, T, C)


# ---------------------------------------------------------------------------
# Reference (pure f32 JAX) for a sanity check
# ---------------------------------------------------------------------------
def cross_attention_ref(params, x, mem, n_head):
    B, T, C = x.shape
    T_MEM = mem.shape[1]
    D = C // n_head
    q = x @ params["wq_w"] + params["wq_b"]
    kv = mem @ params["wkv_w"] + params["wkv_b"]
    k, v = kv[..., :C], kv[..., C:]
    q = q.reshape(B, T, n_head, D).transpose(0, 2, 1, 3)
    k = k.reshape(B, T_MEM, n_head, D).transpose(0, 2, 1, 3)
    v = v.reshape(B, T_MEM, n_head, D).transpose(0, 2, 1, 3)
    s = jnp.einsum("bhtd,bhsd->bhts", q, k) / math.sqrt(D)
    p = jax.nn.softmax(s, axis=-1)
    y = jnp.einsum("bhts,bhsd->bhtd", p, v)
    y = y.transpose(0, 2, 1, 3).reshape(B, T, C)
    return y @ params["proj_w"] + params["proj_b"]


# ---------------------------------------------------------------------------
if __name__ == "__main__":
    # Small config consistent with the module: n_embd % n_head == 0.
    B, T, T_MEM, C, n_head = 2, 8, 16, 32, 4

    key = jax.random.PRNGKey(0)
    kp, kx, km = jax.random.split(key, 3)

    params = init_cross_attention_params(kp, C, bias=True)
    x = jax.random.normal(kx, (B, T, C), dtype=jnp.float32)
    mem = jax.random.normal(km, (B, T_MEM, C), dtype=jnp.float32)

    out = cross_attention_forward(params, x, mem, n_head)
    out = jax.block_until_ready(out)

    ref = cross_attention_ref(params, x, mem, n_head)
    assert out.shape == (B, T, C)
    # bf16 MXU operands + approximate EUP reciprocal in the softmax -> relaxed
    # tolerance vs the exact-f32 reference.
    assert jnp.allclose(out, ref, atol=3e-2, rtol=3e-2), "Pallas output mismatch vs reference"

    print("KERNEL_OK")
</pallas_src>

<mosaic_0001>
module attributes {stable_mosaic.version = 11 : i64} {
  func.func @_linear_kernel(%arg0: i32, %arg1: i32, %arg2: i32, %arg3: memref<16x32xf32, #tpu.memory_space<vmem>>, %arg4: memref<32x32xbf16, #tpu.memory_space<vmem>>, %arg5: memref<1x32xf32, #tpu.memory_space<vmem>>, %arg6: memref<16x32xf32, #tpu.memory_space<vmem>>, %arg7: memref<16x32xf32, #tpu.memory_space<vmem>>) attributes {dimension_semantics = [#tpu.dimension_semantics<parallel>, #tpu.dimension_semantics<parallel>, #tpu.dimension_semantics<arbitrary>], iteration_bounds = array<i64: 1, 1, 1>, scalar_prefetch = 0 : i64, scratch_operands = 1 : i64, tpu.core_type = #tpu.core_type<tc>, window_params = [{transform_indices = @transform_0, window_bounds = array<i64: 16, 32>}, {transform_indices = @transform_1, window_bounds = array<i64: 32, 32>}, {transform_indices = @transform_2, window_bounds = array<i64: 1, 32>}, {transform_indices = @transform_3, window_bounds = array<i64: 16, 32>}]} {
    %c0_i32 = arith.constant 0 : i32
    %0 = arith.cmpi eq, %arg2, %c0_i32 : i32
    %1 = arith.extui %0 : i1 to i32
    %c0_i32_0 = arith.constant 0 : i32
    %2 = arith.cmpi ne, %1, %c0_i32_0 : i32
    scf.if %2 {
      %cst_10 = arith.constant 0.000000e+00 : f32
      %13 = vector.broadcast %cst_10 : f32 to vector<16x32xf32>
      %c0_11 = arith.constant 0 : index
      %c0_12 = arith.constant 0 : index
      %14 = vector.load %arg7[%c0_11, %c0_12] : memref<16x32xf32, #tpu.memory_space<vmem>>, vector<16x32xf32>
      tpu.vector_store %arg7[%c0_11, %c0_12], %13 {strides = array<i32>} : memref<16x32xf32, #tpu.memory_space<vmem>>, vector<16x32xf32>,
    } else {
    }
    %c0 = arith.constant 0 : index
    %c0_1 = arith.constant 0 : index
    %3 = vector.load %arg7[%c0, %c0_1] : memref<16x32xf32, #tpu.memory_space<vmem>>, vector<16x32xf32>
    %c0_2 = arith.constant 0 : index
    %c0_3 = arith.constant 0 : index
    %4 = vector.load %arg3[%c0_2, %c0_3] : memref<16x32xf32, #tpu.memory_space<vmem>>, vector<16x32xf32>
    %5 = arith.truncf %4 : vector<16x32xf32> to vector<16x32xbf16>
    %c0_4 = arith.constant 0 : index
    %c0_5 = arith.constant 0 : index
    %6 = vector.load %arg4[%c0_4, %c0_5] : memref<32x32xbf16, #tpu.memory_space<vmem>>, vector<32x32xbf16>
    %cst = arith.constant dense<0.000000e+00> : vector<16x32xf32>
    %7 = tpu.matmul %5, %6, %cst {dimension_numbers = #tpu.dot_dimension_numbers<[1], [0], [0], [1], [0, 0, 1, 1], [], []>} : vector<16x32xbf16>, vector<32x32xbf16>, vector<16x32xf32> -> vector<16x32xf32>
    %8 = arith.addf %3, %7 : vector<16x32xf32>
    %c0_6 = arith.constant 0 : index
    %c0_7 = arith.constant 0 : index
    %9 = vector.load %arg7[%c0_6, %c0_7] : memref<16x32xf32, #tpu.memory_space<vmem>>, vector<16x32xf32>
    tpu.vector_store %arg7[%c0_6, %c0_7], %8 {strides = array<i32>} : memref<16x32xf32, #tpu.memory_space<vmem>>, vector<16x32xf32>,
    %c0_i32_8 = arith.constant 0 : i32
    %10 = arith.cmpi eq, %arg2, %c0_i32_8 : i32
    %11 = arith.extui %10 : i1 to i32
    %c0_i32_9 = arith.constant 0 : i32
    %12 = arith.cmpi ne, %11, %c0_i32_9 : i32
    scf.if %12 {
      %c0_10 = arith.constant 0 : index
      %c0_11 = arith.constant 0 : index
      %13 = vector.load %arg7[%c0_10, %c0_11] : memref<16x32xf32, #tpu.memory_space<vmem>>, vector<16x32xf32>
      %c0_12 = arith.constant 0 : index
      %c0_13 = arith.constant 0 : index
      %14 = vector.load %arg5[%c0_12, %c0_13] : memref<1x32xf32, #tpu.memory_space<vmem>>, vector<1x32xf32>
      %15 = vector.broadcast %14 : vector<1x32xf32> to vector<16x32xf32>
      %16 = arith.addf %13, %15 : vector<16x32xf32>
      %c0_14 = arith.constant 0 : index
      %c0_15 = arith.constant 0 : index
      %17 = vector.load %arg6[%c0_14, %c0_15] : memref<16x32xf32, #tpu.memory_space<vmem>>, vector<16x32xf32>
      tpu.vector_store %arg6[%c0_14, %c0_15], %16 {strides = array<i32>} : memref<16x32xf32, #tpu.memory_space<vmem>>, vector<16x32xf32>,
    } else {
    }
    return
  }
  func.func @transform_0(%arg0: i32, %arg1: i32, %arg2: i32) -> (i32, i32) {
    %c0_i32 = arith.constant 0 : i32
    return %arg0, %arg2 : i32, i32
  }
  func.func @transform_1(%arg0: i32, %arg1: i32, %arg2: i32) -> (i32, i32) {
    %c0_i32 = arith.constant 0 : i32
    return %arg2, %arg1 : i32, i32
  }
  func.func @transform_2(%arg0: i32, %arg1: i32, %arg2: i32) -> (i32, i32) {
    %c0_i32 = arith.constant 0 : i32
    %c0_i32_0 = arith.constant 0 : i32
    return %c0_i32, %arg1 : i32, i32
  }
  func.func @transform_3(%arg0: i32, %arg1: i32, %arg2: i32) -> (i32, i32) {
    %c0_i32 = arith.constant 0 : i32
    return %arg0, %arg1 : i32, i32
  }
}

</mosaic_0001>

<bundles_post_ra>
// kernel: tpu_custom_call.1
= control target key start
LH: loop header
LB: loop body
LE: loop exit
PB: predicated region body
PF: predicated region fallthrough
CT: control target
= control target key end

     0   :  { %8 = vsyncpa [#allocation4], 0  ;;  %s301_s0 = inlined_call_operand.hbm [shape: f32[16,32], index: 0, kind: input, shape index: {}]   ;;  %s302_s1 = inlined_call_operand.hbm [shape: bf16[32,32], index: 1, kind: input, shape index: {}]   ;;  %s303_s2 = inlined_call_operand.vmem [shape: f32[1,32], index: 2, kind: input, shape index: {}]   ;;  %s304_s3 = inlined_call_operand.hbm [shape: f32[16,32], index: 3, kind: output, shape index: {}]  }
   0x1   :  { %9 = vsyncpa [#allocation7], 0 }
   0x2   :  { %10 = vsyncpa [#allocation5], 0  ;;  %s247_s12 = smov [#allocation3]  }
   0x3   :  { %s16_s13 = sshll.u32 %s247_s12, 4  ;;  %s17_s13 = int_to_ptr.vmem [resolvable:$true] %s16_s13 }
   0x4   :  { %s189_s14 = scalar_lea.vmem %s17_s13, 256  ;;  %p194_p1 = scmp.lt.s32.totalorder %s17_s13, %s17_s13 }
   0x5   :  { %p190_p0 = scmp.ne.s32.totalorder %s17_s13, %s189_s14  ;;  %p195_p2 = scmp.lt.s32.totalorder %s189_s14, %s189_s14 }
   0x7   :  { %p196_p3 = por %p195_p2, %p194_p1 }
   0x9   :  { %p197_p4 = pnand %p196_p3, %p190_p0 }
   0xb   :  { %200 = shalt.err (!%p197_p4)
}
   0xc   :  { %s248_s15 = smov 128   ;;  %s249_s16 = smov 8  }
   0xd   :  { %22 = dma.hbm_to_vmem [thread:$0]  %s301_s0, 256, %s17_s13, [#allocation4], %s248_s15, %s248_s15, %s249_s16  }
   0xe   :  { %s250_s19 = smov [#allocation6]  }
   0xf   :  { %s28_s20 = sshll.u32 %s250_s19, 4  ;;  %s29_s20 = int_to_ptr.vmem [resolvable:$true] %s28_s20 }
  0x10   :  { %s209_s21 = scalar_lea.vmem %s29_s20, 256  ;;  %p214_p6 = scmp.lt.s32.totalorder %s29_s20, %s29_s20 }
  0x11   :  { %p210_p5 = scmp.ne.s32.totalorder %s29_s20, %s209_s21  ;;  %p215_p7 = scmp.lt.s32.totalorder %s209_s21, %s209_s21 }
  0x13   :  { %p216_p8 = por %p215_p7, %p214_p6 }
  0x15   :  { %p217_p9 = pnand %p216_p8, %p210_p5 }
  0x17   :  { %220 = shalt.err (!%p217_p9)
}
  0x18   :  { %s251_s22 = smov 64   ;;  %s252_s23 = smov 4  }
  0x19   :  { %34 = dma.hbm_to_vmem [thread:$0]  %s302_s1, 256, %s29_s20, [#allocation7], %s251_s22, %s251_s22, %s252_s23  }
  0x1a   :  { %241 = dma.done.wait [#allocation4], 256  }
  0x1b   :  { %242 = vsyncadd [#allocation4], 4294967040 }
  0x1c   :  { %243 = dma.done.wait [#allocation7], 256  }
  0x1d   :  { %244 = vsyncadd [#allocation7], 4294967040  ;;  %vm48_vm0 = vcmask 261120   ;;  %v253_v0 = vmov 0.0   ;;  %vm254_vm1 = vmmov 0   ;;  %v179_v1 = vld [vmem:[#allocation6 + $0x8] sm:$0xff]  }
  0x1e   :  { %162 = vmatprep.subr.bf16.mxu0 %v253_v0  ;;  %166 = vmatprep.mubr.msk.bf16.mxu0 %vm254_vm1, %v253_v0  ;;  %49 = vst.msk [vmem:[#allocation2] sm:$0xff] %vm48_vm0, %v253_v0  ;;  %50 = vst.msk [vmem:[#allocation2 + $0x8] sm:$0xff] %vm48_vm0, %v253_v0  ;;  %v180_v2 = vld [vmem:[#allocation6] sm:$0xff]   ;;  %v53_v3 = vld [vmem:[#allocation3] sm:$0xff]  ;;  %s255_s26 = smov [#allocation8]  }
  0x1f   :  { %163 = vmatpush3.bf16.msra.mxu0 %v179_v1  ;;  %v54_v4 = vld [vmem:[#allocation3 + $0x8] sm:$0xff]  ;;  %v158_v14 = vld [vmem:[%s303_s2] ss:$0 sm:$0xff]  ;;  %s142_s27 = sshll.u32 %s255_s26, 4  ;;  %s143_s27 = int_to_ptr.vmem [resolvable:$true] %s142_s27 }
  0x20   :  { %164 = vmatprep.subr.bf16.mxu0 %v253_v0  ;;  %v55_v5 = vpack.c.bf16 %v54_v4, %v53_v3  ;;  %s221_s28 = scalar_lea.vmem %s143_s27, 256  ;;  %p226_p11 = scmp.lt.s32.totalorder %s143_s27, %s143_s27 }
  0x21   :  { %p222_p10 = scmp.ne.s32.totalorder %s143_s27, %s221_s28  ;;  %p227_p12 = scmp.lt.s32.totalorder %s221_s28, %s221_s28 }
  0x23   :  { %165 = vmatpush3.bf16.msra.mxu0 %v180_v2  ;;  %p228_p13 = por %p227_p12, %p226_p11 }
  0x25   :  { %v51_v6 = vld [vmem:[#allocation2] sm:$0xff]  ;;  %v52_v10 = vld [vmem:[#allocation2 + $0x8] sm:$0xff]  ;;  %p229_p0 = pnand %p228_p13, %p222_p10 }
  0x26   :  { %167 = vmatmul.mubr.msk.bf16.vlgmr.msra.gmra.mxu0 %vm48_vm0, %v55_v5 }
  0xe6   :  { %v110_v7 = vpop.f32.mrf.mxu0 }
  0xe7   :  { %v117_v8 = vadd.f32 %v110_v7, %v51_v6 }
  0xe8   :  { %v168_v9 = vpop.f32.mrf.mxu0 }
  0xe9   :  { %119 = vst.msk [vmem:[#allocation2] sm:$0xff] %vm48_vm0, %v117_v8 }
  0xea   :  { %v113_v11 = vpop.f32.mrf.mxu0 }
  0xeb   :  { %v118_v12 = vadd.f32 %v113_v11, %v52_v10 }
  0xec   :  { %v169_v13 = vpop.f32.mrf.mxu0 }
  0xed   :  { %120 = vst.msk [vmem:[#allocation2 + $0x8] sm:$0xff] %vm48_vm0, %v118_v12 }
  0xf0   :  { %v124_v15 = vld [vmem:[#allocation2] sm:$0xff] }
  0xf1   :  { %v133_v16 = vadd.f32 %v158_v14, %v124_v15 }
  0xf3   :  { %135 = vst.msk [vmem:[#allocation8] sm:$0xff] %vm48_vm0, %v133_v16 }
  0xf4   :  { %v125_v17 = vld [vmem:[#allocation2 + $0x8] sm:$0xff] }
  0xf5   :  { %v134_v18 = vadd.f32 %v158_v14, %v125_v17 }
  0xf7   :  { %136 = vst.msk [vmem:[#allocation8 + $0x8] sm:$0xff] %vm48_vm0, %v134_v18 }
  0xf8   :  { %232 = shalt.err (!%p229_p0)
}
  0xf9   :  { %148 = dma.vmem_to_hbm [thread:$0]  %s143_s27, 256, %s304_s3, [#allocation5], %s248_s15, %s248_s15, %s249_s16  }
  0xfa   :  { %245 = dma.done.wait [#allocation5], 256  }
  0xfb   :  { %246 = vsyncadd [#allocation5], 4294967040 }
  0xfc   :  { %152 = vsyncpa [#allocation4], 1 }
  0xfd   :  { %153 = vsyncpa [#allocation7], 1 }
  0xfe   :  { %154 = vsyncpa [#allocation5], 1 }

</bundles_post_ra>
